<compile_context>
chip_gen: v5e
topology: v5e:2x2
jax: 0.10.0
libtpu: 0.0.40
codegen_flags: <defaults>
</compile_context>

<pallas_src>
import functools
from collections import namedtuple

import jax
import jax.numpy as jnp
from jax.experimental import pallas as pl
from jax.experimental.pallas import tpu as pltpu


BitType = namedtuple("BitType", ["lower_bound", "upper_bound"])
INT8 = BitType(lower_bound=-128.0, upper_bound=127.0)

_DEFAULT_VMEM_BYTES = 64 * 1024 * 1024     # v7x per-TC physical (most restrictive)


# ----------------------------------------------------------------------------
# VMEM / tiling helpers (generation-aware)
# ----------------------------------------------------------------------------
def _physical_vmem_bytes():
    try:
        info = pltpu.get_tpu_info()
        cap = getattr(info, "vmem_capacity_bytes", None)
        if cap:
            return int(cap)
    except Exception:
        pass
    return _DEFAULT_VMEM_BYTES


def _vmem_limit_bytes():
    # ~25% headroom for compiler scratch / pipeline bookkeeping
    return int(_physical_vmem_bytes() * 3 // 4)


def _round_up(x, m):
    return ((x + m - 1) // m) * m


def _cdiv(a, b):
    return (a + b - 1) // b


def _pick_tile(total, quantum, cap_elems):
    """Largest multiple of `quantum` dividing `total` that fits `cap_elems`,
    preferring a choice with >= 2 grid steps. Falls back to the full dim."""
    if total % quantum != 0:
        return total                       # full-dim block is always legal
    divisors = [q for q in range(quantum, total + 1, quantum) if total % q == 0]
    fitting = [q for q in divisors if q <= cap_elems]
    if not fitting:
        return quantum                     # smallest legal tile
    multi = [q for q in fitting if total // q >= 2]
    return max(multi) if multi else max(fitting)


# ----------------------------------------------------------------------------
# Pallas kernels (observer fused; compute in f32, store in input dtype)
# ----------------------------------------------------------------------------
def _rowwise_fq_kernel(x_ref, o_ref, *, qmin, qmax, bcorr):
    """Quant axis = rows (output channels), reduction axis = lanes (K)."""
    x = x_ref[...].astype(jnp.float32)                       # (bm, K)
    # fused per-row min-max observer
    xmin = jnp.min(x, axis=-1, keepdims=True)
    xmax = jnp.max(x, axis=-1, keepdims=True)
    scale = jnp.maximum((xmax - xmin) / (qmax - qmin), 1e-8)  # (bm, 1)
    inv_scale = 1.0 / scale                                   # exact, per-row only
    zp = jnp.clip(qmin - jnp.round(xmin * inv_scale), qmin, qmax)
    q = jnp.clip(jnp.round(x * inv_scale + zp), qmin, qmax)
    dq = (q - zp) * scale                                     # weight_q

    if bcorr:
        k = x.shape[-1]
        denom = float(max(k - 1, 1))                          # guard K == 1
        s_x = jnp.sum(x, axis=-1, keepdims=True)
        s_x2 = jnp.sum(x * x, axis=-1, keepdims=True)
        s_q = jnp.sum(dq, axis=-1, keepdims=True)
        s_q2 = jnp.sum(dq * dq, axis=-1, keepdims=True)
        mean_x = s_x / k
        mean_q = s_q / k
        var_x = jnp.maximum(s_x2 - k * mean_x * mean_x, 0.0) / denom
        var_q = jnp.maximum(s_q2 - k * mean_q * mean_q, 0.0) / denom
        var_corr = jnp.sqrt(var_x) / (jnp.sqrt(var_q) + 1e-8)
        # (wq - bias_q) * var_corr + bias_q ; then - bias_q + bias_orig
        dq = (dq - mean_q) * var_corr + mean_x

    o_ref[...] = dq.astype(o_ref.dtype)


def _colwise_fq_kernel(x_ref, o_ref, *, qmin, qmax):
    """Quant axis = lanes (features D), reduction axis = rows (N or B*S)."""
    x = x_ref[...].astype(jnp.float32)                        # (R, bd)
    xmin = jnp.min(x, axis=0, keepdims=True)                  # (1, bd)
    xmax = jnp.max(x, axis=0, keepdims=True)
    scale = jnp.maximum((xmax - xmin) / (qmax - qmin), 1e-8)
    inv_scale = 1.0 / scale
    zp = jnp.clip(qmin - jnp.round(xmin * inv_scale), qmin, qmax)
    q = jnp.clip(jnp.round(x * inv_scale + zp), qmin, qmax)
    o_ref[...] = ((q - zp) * scale).astype(o_ref.dtype)


def _nchw_fq_kernel(x_ref, o_ref, *, qmin, qmax):
    """NCHW activations reshaped to (N, C, H*W); quant per channel (axis 1)."""
    x = x_ref[...].astype(jnp.float32)                        # (N, bc, HW)
    xmin = jnp.min(jnp.min(x, axis=2, keepdims=True), axis=0, keepdims=True)
    xmax = jnp.max(jnp.max(x, axis=2, keepdims=True), axis=0, keepdims=True)
    scale = jnp.maximum((xmax - xmin) / (qmax - qmin), 1e-8)  # (1, bc, 1)
    inv_scale = 1.0 / scale
    zp = jnp.clip(qmin - jnp.round(xmin * inv_scale), qmin, qmax)
    q = jnp.clip(jnp.round(x * inv_scale + zp), qmin, qmax)
    o_ref[...] = ((q - zp) * scale).astype(o_ref.dtype)


# ----------------------------------------------------------------------------
# pallas_call wrappers (block sizing from VMEM budget)
# ----------------------------------------------------------------------------
def _rowwise_call(x2d, *, qmin, qmax, bcorr):
    r, k = x2d.shape
    dtype = x2d.dtype
    vmem_limit = _vmem_limit_bytes()
    # 2x double-buffered in/out in input dtype + f32 compute temporaries
    per_elem = 4 * dtype.itemsize + 16
    cap_rows = max(8, vmem_limit // max(1, k * per_elem))

    r8 = _round_up(r, 8)
    bm = min(1024, cap_rows, r8)
    bm = max(8, (bm // 8) * 8)
    # prefer >= 2 grid steps (v7x megacore + pipelining) when it costs no padding
    if bm >= r8 and r8 >= 16 and r8 % 16 == 0:
        bm = r8 // 2
    r_pad = _round_up(r, bm)
    x_p = x2d if r_pad == r else jnp.pad(x2d, ((0, r_pad - r), (0, 0)))

    kern = functools.partial(_rowwise_fq_kernel, qmin=qmin, qmax=qmax, bcorr=bcorr)
    out = pl.pallas_call(
        kern,
        out_shape=jax.ShapeDtypeStruct((r_pad, k), dtype),
        grid=(r_pad // bm,),
        in_specs=[pl.BlockSpec((bm, k), lambda i: (i, 0))],
        out_specs=pl.BlockSpec((bm, k), lambda i: (i, 0)),
        compiler_params=pltpu.CompilerParams(
            dimension_semantics=("parallel",),
            vmem_limit_bytes=vmem_limit),
    )(x_p)
    return out[:r] if r_pad != r else out


def _colwise_call(x2d, *, qmin, qmax):
    r, d = x2d.shape
    dtype = x2d.dtype
    vmem_limit = _vmem_limit_bytes()
    per_elem = 4 * dtype.itemsize + 16
    cap_cols = max(1, vmem_limit // max(1, r * per_elem))
    bd = _pick_tile(d, 128, cap_cols)
    # TODO(synk): if R is so large that a (R, 128) block exceeds VMEM, a
    # two-pass (tiled observer) variant would be needed; not implemented here.
    kern = functools.partial(_colwise_fq_kernel, qmin=qmin, qmax=qmax)
    return pl.pallas_call(
        kern,
        out_shape=jax.ShapeDtypeStruct((r, d), dtype),
        grid=(d // bd,),
        in_specs=[pl.BlockSpec((r, bd), lambda j: (0, j))],
        out_specs=pl.BlockSpec((r, bd), lambda j: (0, j)),
        compiler_params=pltpu.CompilerParams(
            dimension_semantics=("parallel",),
            vmem_limit_bytes=vmem_limit),
    )(x2d)


def _nchw_call(x3, *, qmin, qmax):
    n, c, hw = x3.shape
    dtype = x3.dtype
    vmem_limit = _vmem_limit_bytes()
    per_elem = 4 * dtype.itemsize + 16
    cap_ch = max(1, vmem_limit // max(1, n * hw * per_elem))
    bc = _pick_tile(c, 8, cap_ch)
    kern = functools.partial(_nchw_fq_kernel, qmin=qmin, qmax=qmax)
    return pl.pallas_call(
        kern,
        out_shape=jax.ShapeDtypeStruct((n, c, hw), dtype),
        grid=(c // bc,),
        in_specs=[pl.BlockSpec((n, bc, hw), lambda j: (0, j, 0))],
        out_specs=pl.BlockSpec((n, bc, hw), lambda j: (0, j, 0)),
        compiler_params=pltpu.CompilerParams(
            dimension_semantics=("parallel",),
            vmem_limit_bytes=vmem_limit),
    )(x3)


# ----------------------------------------------------------------------------
# Module wrapper (layout plumbing only; reshapes are contiguous -> free)
# ----------------------------------------------------------------------------
class BaseQuantizerPallas:
    def __init__(self, bit_type=INT8, module_type="conv_weight",
                 bcorr_weights=False):
        self.bit_type = bit_type
        self.module_type = module_type
        self.bcorr_weights = bcorr_weights

    def __call__(self, inputs):
        qmin = float(self.bit_type.lower_bound)
        qmax = float(self.bit_type.upper_bound)
        mt = self.module_type

        if mt in ("conv_weight", "linear_weight"):
            # (O, I, KH, KW) -> (O, K) / (O, I): per-output-channel rows
            o = inputs.shape[0]
            x2d = inputs.reshape(o, -1)
            out2d = _rowwise_call(x2d, qmin=qmin, qmax=qmax,
                                  bcorr=self.bcorr_weights)
            return out2d.reshape(inputs.shape)

        if mt == "activation":
            # TODO(synk): bcorr_weights=True with activations (torch would do a
            # per-sample correction) is not supported in this fused path.
            if inputs.ndim == 4:                       # NCHW, per-channel
                n, c, h, w = inputs.shape
                out3 = _nchw_call(inputs.reshape(n, c, h * w),
                                  qmin=qmin, qmax=qmax)
                return out3.reshape(n, c, h, w)
            if inputs.ndim == 3:                       # (B, S, D), per-feature
                b, s, d = inputs.shape
                out2 = _colwise_call(inputs.reshape(b * s, d),
                                     qmin=qmin, qmax=qmax)
                return out2.reshape(b, s, d)
            if inputs.ndim == 2:                       # (N, D), per-feature
                return _colwise_call(inputs, qmin=qmin, qmax=qmax)
            raise NotImplementedError(f"activation ndim={inputs.ndim}")

        raise NotImplementedError(mt)


# ----------------------------------------------------------------------------
# Pure-JAX reference (mirrors the PyTorch math) for sanity checks
# ----------------------------------------------------------------------------
def _ref_fakequant(x, axis_reduce, qmin, qmax):
    xmin = jnp.min(x, axis=axis_reduce, keepdims=True)
    xmax = jnp.max(x, axis=axis_reduce, keepdims=True)
    scale = jnp.maximum((xmax - xmin) / (qmax - qmin), 1e-8)
    inv_scale = 1.0 / scale
    zp = jnp.clip(qmin - jnp.round(xmin * inv_scale), qmin, qmax)
    q = jnp.clip(jnp.round(x * inv_scale + zp), qmin, qmax)
    return (q - zp) * scale


def _ref_bias_correction(x2d, dq2d):
    bias_q = dq2d.mean(-1, keepdims=True)
    bias_o = x2d.mean(-1, keepdims=True)
    std_q = jnp.std(dq2d, axis=-1, ddof=1, keepdims=True)
    std_o = jnp.std(x2d, axis=-1, ddof=1, keepdims=True)
    var_corr = std_o / (std_q + 1e-8)
    return (dq2d - bias_q) * var_corr + bias_o


if __name__ == "__main__":
    key = jax.random.PRNGKey(0)
    k_w, k_l, k_a4, k_a3 = jax.random.split(key, 4)
    QMIN, QMAX = INT8.lower_bound, INT8.upper_bound

    # conv_weight (O, I, KH, KW) = (16, 4, 4, 4) with bias correction
    w = jax.random.normal(k_w, (16, 4, 4, 4), dtype=jnp.float32)
    qw = BaseQuantizerPallas(INT8, "conv_weight", bcorr_weights=True)
    w_out = jax.block_until_ready(qw(w))
    w2 = w.reshape(16, -1)
    w_ref = _ref_bias_correction(w2, _ref_fakequant(w2, -1, QMIN, QMAX)).reshape(w.shape)
    assert jnp.allclose(w_out, w_ref, atol=1e-4, rtol=1e-4), "conv_weight mismatch"

    # linear_weight (O, I) = (16, 32), no bias correction
    wl = jax.random.normal(k_l, (16, 32), dtype=jnp.float32)
    ql = BaseQuantizerPallas(INT8, "linear_weight", bcorr_weights=False)
    l_out = jax.block_until_ready(ql(wl))
    l_ref = _ref_fakequant(wl, -1, QMIN, QMAX)
    assert jnp.allclose(l_out, l_ref, atol=1e-4, rtol=1e-4), "linear_weight mismatch"

    # activation NCHW (2, 4, 16, 16), per-channel, no transposes
    x4 = jax.random.normal(k_a4, (2, 4, 16, 16), dtype=jnp.float32)
    qa = BaseQuantizerPallas(INT8, "activation", bcorr_weights=False)
    a4_out = jax.block_until_ready(qa(x4))
    a4_ref = _ref_fakequant(x4, (0, 2, 3), QMIN, QMAX)
    assert a4_out.shape == x4.shape
    assert jnp.allclose(a4_out, a4_ref, atol=1e-4, rtol=1e-4), "NCHW activation mismatch"

    # activation (B, S, D) = (2, 8, 32), per-feature, bf16 in -> bf16 out
    x3 = jax.random.normal(k_a3, (2, 8, 32), dtype=jnp.float32).astype(jnp.bfloat16)
    a3_out = jax.block_until_ready(qa(x3))
    assert a3_out.shape == x3.shape and a3_out.dtype == jnp.bfloat16
    assert bool(jnp.all(jnp.isfinite(a3_out.astype(jnp.float32))))

    print("KERNEL_OK")
</pallas_src>

<mosaic_0001>
module attributes {stable_mosaic.version = 11 : i64} {
  func.func @_rowwise_fq_kernel(%arg0: i32, %arg1: memref<8x64xf32, #tpu.memory_space<vmem>>, %arg2: memref<8x64xf32, #tpu.memory_space<vmem>>) attributes {dimension_semantics = [#tpu.dimension_semantics<parallel>], iteration_bounds = array<i64: 2>, scalar_prefetch = 0 : i64, scratch_operands = 0 : i64, tpu.core_type = #tpu.core_type<tc>, window_params = [{transform_indices = @transform_0, window_bounds = array<i64: 8, 64>}, {transform_indices = @transform_1, window_bounds = array<i64: 8, 64>}]} {
    %c0 = arith.constant 0 : index
    %c0_0 = arith.constant 0 : index
    %0 = vector.load %arg1[%c0, %c0_0] : memref<8x64xf32, #tpu.memory_space<vmem>>, vector<8x64xf32>
    %cst = arith.constant dense<0x7F800000> : vector<8xf32>
    %1 = vector.multi_reduction <minimumf>, %0, %cst [1] : vector<8x64xf32> to vector<8xf32>
    %2 = vector.shape_cast %1 : vector<8xf32> to vector<8x1xf32>
    %cst_1 = arith.constant dense<0xFF800000> : vector<8xf32>
    %3 = vector.multi_reduction <maximumf>, %0, %cst_1 [1] : vector<8x64xf32> to vector<8xf32>
    %4 = vector.shape_cast %3 : vector<8xf32> to vector<8x1xf32>
    %5 = arith.subf %4, %2 : vector<8x1xf32>
    %cst_2 = arith.constant 2.550000e+02 : f32
    %6 = vector.broadcast %cst_2 : f32 to vector<8x1xf32>
    %7 = arith.divf %5, %6 : vector<8x1xf32>
    %cst_3 = arith.constant 9.99999993E-9 : f32
    %8 = vector.broadcast %cst_3 : f32 to vector<8x1xf32>
    %9 = arith.maximumf %7, %8 : vector<8x1xf32>
    %cst_4 = arith.constant 1.000000e+00 : f32
    %10 = vector.broadcast %cst_4 : f32 to vector<8x1xf32>
    %11 = arith.divf %10, %9 : vector<8x1xf32>
    %12 = arith.mulf %2, %11 : vector<8x1xf32>
    %13 = math.roundeven %12 : vector<8x1xf32>
    %cst_5 = arith.constant -1.280000e+02 : f32
    %14 = vector.broadcast %cst_5 : f32 to vector<8x1xf32>
    %15 = arith.subf %14, %13 : vector<8x1xf32>
    %cst_6 = arith.constant -1.280000e+02 : f32
    %cst_7 = arith.constant 1.270000e+02 : f32
    %16 = vector.broadcast %cst_6 : f32 to vector<8x1xf32>
    %17 = arith.maximumf %16, %15 : vector<8x1xf32>
    %18 = vector.broadcast %cst_7 : f32 to vector<8x1xf32>
    %19 = arith.minimumf %18, %17 : vector<8x1xf32>
    %20 = vector.broadcast %11 : vector<8x1xf32> to vector<8x64xf32>
    %21 = arith.mulf %0, %20 : vector<8x64xf32>
    %22 = vector.broadcast %19 : vector<8x1xf32> to vector<8x64xf32>
    %23 = arith.addf %21, %22 : vector<8x64xf32>
    %24 = math.roundeven %23 : vector<8x64xf32>
    %cst_8 = arith.constant -1.280000e+02 : f32
    %cst_9 = arith.constant 1.270000e+02 : f32
    %25 = vector.broadcast %cst_8 : f32 to vector<8x64xf32>
    %26 = arith.maximumf %25, %24 : vector<8x64xf32>
    %27 = vector.broadcast %cst_9 : f32 to vector<8x64xf32>
    %28 = arith.minimumf %27, %26 : vector<8x64xf32>
    %29 = vector.broadcast %19 : vector<8x1xf32> to vector<8x64xf32>
    %30 = arith.subf %28, %29 : vector<8x64xf32>
    %31 = vector.broadcast %9 : vector<8x1xf32> to vector<8x64xf32>
    %32 = arith.mulf %30, %31 : vector<8x64xf32>
    %cst_10 = arith.constant dense<0.000000e+00> : vector<8xf32>
    %33 = vector.multi_reduction <add>, %0, %cst_10 [1] : vector<8x64xf32> to vector<8xf32>
    %34 = vector.shape_cast %33 : vector<8xf32> to vector<8x1xf32>
    %35 = arith.mulf %0, %0 : vector<8x64xf32>
    %cst_11 = arith.constant dense<0.000000e+00> : vector<8xf32>
    %36 = vector.multi_reduction <add>, %35, %cst_11 [1] : vector<8x64xf32> to vector<8xf32>
    %37 = vector.shape_cast %36 : vector<8xf32> to vector<8x1xf32>
    %cst_12 = arith.constant dense<0.000000e+00> : vector<8xf32>
    %38 = vector.multi_reduction <add>, %32, %cst_12 [1] : vector<8x64xf32> to vector<8xf32>
    %39 = vector.shape_cast %38 : vector<8xf32> to vector<8x1xf32>
    %40 = arith.mulf %32, %32 : vector<8x64xf32>
    %cst_13 = arith.constant dense<0.000000e+00> : vector<8xf32>
    %41 = vector.multi_reduction <add>, %40, %cst_13 [1] : vector<8x64xf32> to vector<8xf32>
    %42 = vector.shape_cast %41 : vector<8xf32> to vector<8x1xf32>
    %cst_14 = arith.constant 6.400000e+01 : f32
    %43 = vector.broadcast %cst_14 : f32 to vector<8x1xf32>
    %44 = arith.divf %34, %43 : vector<8x1xf32>
    %cst_15 = arith.constant 6.400000e+01 : f32
    %45 = vector.broadcast %cst_15 : f32 to vector<8x1xf32>
    %46 = arith.divf %39, %45 : vector<8x1xf32>
    %cst_16 = arith.constant 6.400000e+01 : f32
    %47 = vector.broadcast %cst_16 : f32 to vector<8x1xf32>
    %48 = arith.mulf %47, %44 : vector<8x1xf32>
    %49 = arith.mulf %48, %44 : vector<8x1xf32>
    %50 = arith.subf %37, %49 : vector<8x1xf32>
    %cst_17 = arith.constant 0.000000e+00 : f32
    %51 = vector.broadcast %cst_17 : f32 to vector<8x1xf32>
    %52 = arith.maximumf %50, %51 : vector<8x1xf32>
    %cst_18 = arith.constant 6.300000e+01 : f32
    %53 = vector.broadcast %cst_18 : f32 to vector<8x1xf32>
    %54 = arith.divf %52, %53 : vector<8x1xf32>
    %cst_19 = arith.constant 6.400000e+01 : f32
    %55 = vector.broadcast %cst_19 : f32 to vector<8x1xf32>
    %56 = arith.mulf %55, %46 : vector<8x1xf32>
    %57 = arith.mulf %56, %46 : vector<8x1xf32>
    %58 = arith.subf %42, %57 : vector<8x1xf32>
    %cst_20 = arith.constant 0.000000e+00 : f32
    %59 = vector.broadcast %cst_20 : f32 to vector<8x1xf32>
    %60 = arith.maximumf %58, %59 : vector<8x1xf32>
    %cst_21 = arith.constant 6.300000e+01 : f32
    %61 = vector.broadcast %cst_21 : f32 to vector<8x1xf32>
    %62 = arith.divf %60, %61 : vector<8x1xf32>
    %63 = math.sqrt %54 : vector<8x1xf32>
    %64 = math.sqrt %62 : vector<8x1xf32>
    %cst_22 = arith.constant 9.99999993E-9 : f32
    %65 = vector.broadcast %cst_22 : f32 to vector<8x1xf32>
    %66 = arith.addf %64, %65 : vector<8x1xf32>
    %67 = arith.divf %63, %66 : vector<8x1xf32>
    %68 = vector.broadcast %46 : vector<8x1xf32> to vector<8x64xf32>
    %69 = arith.subf %32, %68 : vector<8x64xf32>
    %70 = vector.broadcast %67 : vector<8x1xf32> to vector<8x64xf32>
    %71 = arith.mulf %69, %70 : vector<8x64xf32>
    %72 = vector.broadcast %44 : vector<8x1xf32> to vector<8x64xf32>
    %73 = arith.addf %71, %72 : vector<8x64xf32>
    %c0_23 = arith.constant 0 : index
    %c0_24 = arith.constant 0 : index
    %74 = vector.load %arg2[%c0_23, %c0_24] : memref<8x64xf32, #tpu.memory_space<vmem>>, vector<8x64xf32>
    tpu.vector_store %arg2[%c0_23, %c0_24], %73 {strides = array<i32>} : memref<8x64xf32, #tpu.memory_space<vmem>>, vector<8x64xf32>,
    return
  }
  func.func @transform_0(%arg0: i32) -> (i32, i32) {
    %c0_i32 = arith.constant 0 : i32
    %c0_i32_0 = arith.constant 0 : i32
    return %arg0, %c0_i32 : i32, i32
  }
  func.func @transform_1(%arg0: i32) -> (i32, i32) {
    %c0_i32 = arith.constant 0 : i32
    %c0_i32_0 = arith.constant 0 : i32
    return %arg0, %c0_i32 : i32, i32
  }
}

</mosaic_0001>

<bundles_post_ra>
// kernel: tpu_custom_call.1
= control target key start
LH: loop header
LB: loop body
LE: loop exit
PB: predicated region body
PF: predicated region fallthrough
CT: control target
= control target key end

     0   :  { %6 = vsyncpa [#allocation3], 0  ;;  %s705_s0 = inlined_call_operand.hbm [shape: f32[16,64], index: 0, kind: input, shape index: {}]   ;;  %s706_s1 = inlined_call_operand.hbm [shape: f32[16,64], index: 1, kind: output, shape index: {}]  }
   0x1   :  { %8 = vsyncpa [#allocation3 + $0x1], 0 }
   0x2   :  { %9 = vsyncpa [#allocation4], 0 }
   0x3   :  { %11 = vsyncpa [#allocation4 + $0x1], 0  ;;  %s551_s6 = smov 0   ;;  %s553_s7 = smov 0  }
   0x4   :  { %s555_s8 = smov 0   ;;  %s557_s9 = smov 0  }
   0x5 LB: > { %s572_s10 = sadd.s32 4294967295, %s536_s9   ;;  %s349_s11 = sadd.s32 4294967294, %s536_s9   ;;  %s536_s9 = sphi %s557_s9, %s716_s9   ;;  %s532_s8 = sphi %s555_s8, %s715_s8   ;;  %s528_s7 = sphi %s553_s7, %s714_s7   ;;  %s524_s6 = sphi %s551_s6, %s713_s6  }
   0x6   : > { %s576_s12 = sadd.s32 1, %s536_s9   ;;  %s24_s13 = sadd.s32 1, %s532_s8 }
   0x7   : > { %s21_s14 = ssub.s32 %s536_s9, %s576_s12  ;;  %p31_p0 = scmp.ne.s32.totalorder %s532_s8, %s528_s7 }
   0x8   : > { %p22_p1 = scmp.eq.s32.totalorder %s21_s14, 0  ;;  %p32_p2 = scmp.eq.s32.totalorder %s536_s9, 0 }
   0x9   : > { %p37_p3 = scmp.ne.s32.totalorder %s528_s7, %s524_s6  ;;  %p38_p4 = scmp.eq.s32.totalorder %s572_s10, 0 }
   0xa   : > { %s588_s15 = scalar_select %p22_p1, %s532_s8, %s24_s13  }
   0xb   : > { %p590_p5 = por %p32_p2, %p31_p0  ;;  %p594_p6 = por %p38_p4, %p37_p3 }
   0xc   : > { %p61_p7 = scmp.eq.s32.totalorder %s572_s10, 1  ;;  %p67_p8 = scmp.eq.s32.totalorder %s349_s11, 1 }
   0xd   : > { %p389_p10 = scmp.lt.s32.totalorder %s536_s9, 2  ;;  %s87_s20 = sand.u32 1, %s532_s8  }
   0xe   : > { %p601_p11 = por %p61_p7, %p31_p0  ;;  %p605_p12 = por %p67_p8, %p37_p3 }
   0xf   : > { %s353_s21 = sshll.u32 %s536_s9, 3  ;;  %s352_s22 = sshll.u32 %s87_s20, 3 }
  0x10   : > { %s95_s25 = scalar_lea.hbm %s705_s0, %s353_s21  ;;  %s91_s27 = scalar_lea.vmem [#allocation2], %s352_s22 }
  0x11   : > { %s97_s26 = sshll.u32 %s95_s25, 4  ;;  %s99_s28 = sshll.u32 %s91_s27, 4  ;;  %s98_s26 = int_to_ptr.hbm [resolvable:$true] %s97_s26  ;;  %s100_s28 = int_to_ptr.vmem [resolvable:$true] %s99_s28 }
  0x12   : > { %p616_p13 = pnand %p389_p10, %p590_p5  ;;  %p354_p0 = scmp.ge.s32.totalorder %s536_s9, 1 }
  0x13   : > { %p104_p1 = scmp.lt.s32.totalorder %s536_s9, 3  ;;  %s88_s30 = scalar_lea.sflag [#allocation3], %s87_s20 }
  0x14   : > { %s440_s2 = sshra.s32 %s98_s26, 4  ;;  %p444_p3 = pneg %p616_p13  ;;  %s441_s2 = int_to_ptr.hbm [resolvable:$true] %s440_s2 }
  0x15   : > { %s442_s3 = scalar_lea.hbm %s441_s2, 8  ;;  %s447_s11 = scalar_lea.hbm %s705_s0, 16 }
  0x16   : > { %p443_p2 = scmp.ne.s32.totalorder %s441_s2, %s442_s3  ;;  %p448_p5 = scmp.lt.s32.totalorder %s441_s2, %s705_s0 }
  0x17   : > { %p449_p8 = scmp.lt.s32.totalorder %s447_s11, %s442_s3 }
  0x18   : > { %p445_p4 = pnand %p444_p3, %p443_p2 }
  0x19   : > { %p450_p10 = por %p449_p8, %p448_p5 }
  0x1a   : > { %p446_p7 = pneg %p445_p4 }
  0x1c   : > { %p451_p9 = pnand %p450_p10, %p446_p7 }
  0x1e   : > { %454 = shalt.err (!%p451_p9)
}
  0x1f   : > { %384 = dma.hbm_to_vmem [thread:$0]  (!%p616_p13), %s98_s26, 128, %s100_s28, %s88_s30  }
  0x20   : > { %p105_p2 = pnand %p354_p0, %p104_p1 }
  0x21   : > { %s637_s16 = sand.u32 (!%p105_p2), 1, %s528_s7  }
  0x22   : > { %108 = sbr.rel (%p105_p2) target bundleno = 405 (0x195), region = 24  ;;  %s355_s20 = sshll.u32 (!%p105_p2), %s637_s16, 3 }
  0x23   : > { %s111_s21 = scalar_lea.sflag (!%p105_p2), [#allocation3], %s637_s16  ;;  %s114_s22 = scalar_lea.vmem (!%p105_p2), [#allocation2], %s355_s20 }
  0x27   : > { %515 = dma.done.wait (%p594_p6), %s111_s21, 128  }
  0x28   : > { %517 = vsyncadd (%p594_p6), %s111_s21, 4294967168  ;;  %vm135_vm0 = vcmask 523264   ;;  %v134_v0 = vld [vmem:[%s114_s22] sm:$0xff]  ;;  %v538_v3 = vmov 255.0   ;;  %v539_v55 = vmov 64.0   ;;  %v540_v60 = vmov 63.0  }
  0x29   : > { %v136_v1 = vsel %vm135_vm0, %v134_v0, inf  ;;  %v139_v2 = vsel %vm135_vm0, %v134_v0, -inf  ;;  %426 = vrcp.f32 %v538_v3  ;;  %v179_v6 = vsel %vm135_vm0, %v134_v0, 0.0  ;;  %s358_s17 = sshll.u32 %s572_s10, 3  ;;  %s133_s10 = scalar_lea.vmem [#allocation5], %s355_s20 }
  0x2a   : > { %137 = vmin.xlane.f32.xlu0 %v136_v1  ;;  %180 = vadd.xlane.f32.xlu2 %v179_v6  ;;  %v182_v30 = vmul.f32 %v134_v0, %v134_v0  ;;  %s274_s25 = scalar_lea.hbm %s706_s1, %s358_s17  ;;  %s276_s26 = sshll.u32 %s133_s10, 4  ;;  %s277_s26 = int_to_ptr.vmem [resolvable:$true] %s276_s26 }
  0x2b   : > { %s278_s27 = sshll.u32 %s274_s25, 4  ;;  %s264_s28 = scalar_lea.sflag [#allocation4], %s637_s16  ;;  %s279_s27 = int_to_ptr.hbm [resolvable:$true] %s278_s27 }
  0x2c   : > { %v183_v33 = vsel %vm135_vm0, %v182_v30, 0.0  ;;  %s484_s29 = sshra.s32 %s279_s27, 4  ;;  %s490_s4 = scalar_lea.hbm %s706_s1, 16  ;;  %s485_s29 = int_to_ptr.hbm [resolvable:$true] %s484_s29 }
  0x2d   : > { %s486_s30 = scalar_lea.hbm %s485_s29, 8  ;;  %p491_p0 = scmp.lt.s32.totalorder %s485_s29, %s706_s1 }
  0x2e   : > { %p487_p6 = scmp.ne.s32.totalorder %s485_s29, %s486_s30  ;;  %p492_p1 = scmp.lt.s32.totalorder %s490_s4, %s486_s30 }
  0x2f   : > { %v427_v4 = vpop.eup %426 }
  0x30   : > { %v144_v5 = vmul.f32 255.0, %v427_v4  ;;  %vm148_vm1 = vweird.f32 %v427_v4  ;;  %p488_p9 = pnand %p487_p6, %p601_p11  ;;  %p493_p3 = por %p492_p1, %p491_p0 }
  0x32   : > { %140 = vmax.xlane.f32.xlu0 %v139_v2  ;;  %v145_v7 = vsub.f32 1.0, %v144_v5  ;;  %184 = vadd.xlane.f32.xlu2 %v183_v33  ;;  %p489_p13 = pneg %p488_p9 }
  0x34   : > { %v146_v9 = vmul.f32 %v427_v4, %v145_v7  ;;  %p494_p4 = pnand %p493_p3, %p489_p13 }
  0x36   : > { %v147_v10 = vadd.f32 %v427_v4, %v146_v9 }
  0x38   : > { %v149_v11 = vsel %vm148_vm1, %v427_v4, %v147_v10 }
  0x9d   : > { %v138_v8 = vpop.xlane.xlu0 %137 }
  0xa5   : > { %v141_v12 = vpop.xlane.xlu0 %140 }
  0xa6   : > { %v142_v13 = vsub.f32 %v141_v12, %v138_v8 }
  0xa8   : > { %v150_v14 = vmul.f32 %v149_v11, %v142_v13 }
  0xaa   : > { %v151_v15 = vmax.f32 %v150_v14, 1e-08 }
  0xac   : > { %428 = vrcp.f32 %v151_v15  ;;  %v163_v19 = vand.u32 2147483648, %v151_v15  ;;  %v161_v21 = vand.u32 2147483647, %v151_v15  ;;  %vm157_vm3 = vweird.f32 %v151_v15 }
  0xad   : > { %430 = vrcp.f32 %v539_v55 }
  0xae   : > { %v164_v23 = vor.u32 1.1754944e-38, %v163_v19  ;;  %vm162_vm5 = vcmp.eq.f32.partialorder %v161_v21, 8.507059e+37  ;;  %432 = vrcp.f32 %v540_v60 }
  0xb2   : > { %v429_v16 = vpop.eup %428 }
  0xb3   : > { %v153_v17 = vmul.f32 %v429_v16, %v151_v15  ;;  %vm158_vm2 = vweird.f32 %v429_v16  ;;  %v431_v56 = vpop.eup %430 }
  0xb4   : > { %vm159_vm4 = vmor %vm157_vm3, %vm158_vm2  ;;  %v194_v57 = vmul.f32 64.0, %v431_v56  ;;  %vm198_vm8 = vweird.f32 %v431_v56  ;;  %v433_v63 = vpop.eup %432 }
  0xb5   : > { %v154_v18 = vsub.f32 1.0, %v153_v17  ;;  %v207_v2 = vmul.f32 63.0, %v433_v63  ;;  %vm211_vm9 = vweird.f32 %v433_v63 }
  0xb6   : > { %v195_v58 = vsub.f32 1.0, %v194_v57 }
  0xb7   : > { %v155_v20 = vmul.f32 %v429_v16, %v154_v18  ;;  %v208_v4 = vsub.f32 1.0, %v207_v2 }
  0xb8   : > { %v196_v59 = vmul.f32 %v431_v56, %v195_v58 }
  0xb9   : > { %v156_v22 = vadd.f32 %v429_v16, %v155_v20 }
  0xba   : > { %v197_v61 = vadd.f32 %v431_v56, %v196_v59 }
  0xbb   : > { %v160_v24 = vsel %vm159_vm4, %v429_v16, %v156_v22 }
  0xbc   : > { %v165_v25 = vsel %vm162_vm5, %v164_v23, %v160_v24  ;;  %v199_v62 = vsel %vm198_vm8, %v431_v56, %v197_v61 }
  0xbd   : > { %v167_v26 = vmul.f32 %v165_v25, %v138_v8  ;;  %v172_v39 = vmul.f32 %v165_v25, %v134_v0  ;;  %v181_v0 = vpop.xlane.xlu2 %180  ;;  %v209_v8 = vmul.f32 %v433_v63, %v208_v4 }
  0xbe   : > { %v658_v1 = vmul.f32 %v199_v62, %v181_v0 }
  0xbf   : > { %v363_v27 = vcvt.f32.s32 %v167_v26  ;;  %v361_v29 = vand.u32 2147483647, %v167_v26  ;;  %v366_v32 = vand.u32 2147483648, %v167_v26  ;;  %v210_v12 = vadd.f32 %v433_v63, %v209_v8 }
  0xc0   : > { %v202_v3 = vmul.f32 64.0, %v658_v1 }
  0xc1   : > { %v364_v28 = vcvt.s32.f32 %v363_v27  ;;  %vm362_vm6 = vcmp.lt.f32.partialorder %v361_v29, 8388608.0  ;;  %v212_v17 = vsel %vm211_vm9, %v433_v63, %v210_v12 }
  0xc2   : > { %v203_v7 = vmul.f32 %v202_v3, %v658_v1 }
  0xc3   : > { %v365_v31 = vand.u32 2147483647, %v364_v28 }
  0xc5   : > { %v367_v34 = vor.u32 %v366_v32, %v365_v31  ;;  %v185_v9 = vpop.xlane.xlu2 %184 }
  0xc6   : > { %v204_v11 = vsub.f32 %v185_v9, %v203_v7 }
  0xc7   : > { %v368_v35 = vsel %vm362_vm6, %v367_v34, %v167_v26 }
  0xc8   : > { %v169_v36 = vsub.f32 -128.0, %v368_v35  ;;  %v205_v16 = vmax.f32 %v204_v11, 0.0 }
  0xca   : > { %v170_v37 = vmax.f32 %v169_v36, -128.0  ;;  %v213_v20 = vmul.f32 %v212_v17, %v205_v16 }
  0xcc   : > { %v171_v38 = vmin.f32 %v170_v37, 127.0  ;;  %vm226_vm12 = vcmp.eq.f32.partialorder %v213_v20, inf  ;;  %vm228_vm14 = vcmp.eq.f32.partialorder %v213_v20, 0.0 }
  0xce   : > { %v173_v40 = vadd.f32 %v172_v39, %v171_v38 }
  0xd0   : > { %v371_v41 = vcvt.f32.s32 %v173_v40  ;;  %v369_v43 = vand.u32 2147483647, %v173_v40  ;;  %v374_v45 = vand.u32 2147483648, %v173_v40 }
  0xd2   : > { %v372_v42 = vcvt.s32.f32 %v371_v41  ;;  %vm370_vm7 = vcmp.lt.f32.partialorder %v369_v43, 8388608.0 }
  0xd4   : > { %v373_v44 = vand.u32 2147483647, %v372_v42 }
  0xd6   : > { %v375_v46 = vor.u32 %v374_v45, %v373_v44  ;;  %v229_v45 = vand.u32 2147483648, %v213_v20 }
  0xd8   : > { %v376_v47 = vsel %vm370_vm7, %v375_v46, %v173_v40 }
  0xd9   : > { %v175_v48 = vmax.f32 %v376_v47, -128.0 }
  0xdb   : > { %v176_v49 = vmin.f32 %v175_v48, 127.0 }
  0xdd   : > { %v177_v50 = vsub.f32 %v176_v49, %v171_v38 }
  0xdf   : > { %v651_v51 = vmul.f32 %v177_v50, %v151_v15 }
  0xe1   : > { %v186_v52 = vsel %vm135_vm0, %v651_v51, 0.0  ;;  %v189_v53 = vmul.f32 %v651_v51, %v651_v51 }
  0xe2   : > { %187 = vadd.xlane.f32.xlu1 %v186_v52 }
  0xe3   : > { %v190_v54 = vsel %vm135_vm0, %v189_v53, 0.0 }
  0xea   : > { %191 = vadd.xlane.f32.xlu1 %v190_v54 }
 0x155   : > { %v188_v5 = vpop.xlane.xlu1 %187 }
 0x156   : > { %v661_v6 = vmul.f32 %v199_v62, %v188_v5 }
 0x158   : > { %v214_v10 = vmul.f32 64.0, %v661_v6  ;;  %v259_v53 = vsub.f32 %v651_v51, %v661_v6 }
 0x15a   : > { %v215_v13 = vmul.f32 %v214_v10, %v661_v6 }
 0x15d   : > { %v192_v14 = vpop.xlane.xlu1 %191 }
 0x15e   : > { %v216_v15 = vsub.f32 %v192_v14, %v215_v13 }
 0x160   : > { %v217_v18 = vmax.f32 %v216_v15, 0.0 }
 0x162   : > { %v218_v19 = vmul.f32 %v217_v18, %v212_v17 }
 0x164   : > { %434 = vrsqrt.f32 %v218_v19  ;;  %vm238_vm10 = vcmp.eq.f32.partialorder %v218_v19, inf  ;;  %v241_v31 = vand.u32 2147483648, %v218_v19  ;;  %vm240_vm11 = vcmp.eq.f32.partialorder %v218_v19, 0.0 }
 0x165   : > { %436 = vrsqrt.f32 %v213_v20 }
 0x16a   : > { %v435_v21 = vpop.eup %434 }
 0x16b   : > { %v232_v22 = vmul.f32 %v435_v21, %v218_v19  ;;  %v437_v23 = vpop.eup %436 }
 0x16c   : > { %v220_v26 = vmul.f32 %v437_v23, %v213_v20 }
 0x16d   : > { %v233_v24 = vmul.f32 %v435_v21, %v232_v22 }
 0x16e   : > { %v221_v29 = vmul.f32 %v437_v23, %v220_v26 }
 0x16f   : > { %v234_v25 = vmul.f32 0.5, %v233_v24 }
 0x170   : > { %v222_v34 = vmul.f32 0.5, %v221_v29 }
 0x171   : > { %v235_v27 = vsub.f32 1.5, %v234_v25 }
 0x172   : > { %v223_v36 = vsub.f32 1.5, %v222_v34 }
 0x173   : > { %v236_v28 = vmul.f32 %v435_v21, %v235_v27 }
 0x174   : > { %v224_v37 = vmul.f32 %v437_v23, %v223_v36 }
 0x175   : > { %v237_v30 = vmul.f32 %v236_v28, %v218_v19 }
 0x176   : > { %v225_v40 = vmul.f32 %v224_v37, %v213_v20 }
 0x177   : > { %v239_v32 = vsel %vm238_vm10, %v218_v19, %v237_v30 }
 0x178   : > { %v242_v33 = vsel %vm240_vm11, %v241_v31, %v239_v32  ;;  %v227_v46 = vsel %vm226_vm12, %v213_v20, %v225_v40 }
 0x179   : > { %v243_v35 = vadd.f32 1e-08, %v242_v33  ;;  %v230_v50 = vsel %vm228_vm14, %v229_v45, %v227_v46 }
 0x17b   : > { %438 = vrcp.f32 %v243_v35  ;;  %v255_v42 = vand.u32 2147483648, %v243_v35  ;;  %v253_v44 = vand.u32 2147483647, %v243_v35  ;;  %vm249_vm15 = vweird.f32 %v243_v35 }
 0x17d   : > { %v256_v48 = vor.u32 1.1754944e-38, %v255_v42  ;;  %vm254_vm2 = vcmp.eq.f32.partialorder %v253_v44, 8.507059e+37 }
 0x181   : > { %v439_v38 = vpop.eup %438 }
 0x182   : > { %v245_v39 = vmul.f32 %v439_v38, %v243_v35  ;;  %vm250_vm13 = vweird.f32 %v439_v38 }
 0x183   : > { %vm251_vm1 = vmor %vm249_vm15, %vm250_vm13 }
 0x184   : > { %v246_v41 = vsub.f32 1.0, %v245_v39 }
 0x186   : > { %v247_v43 = vmul.f32 %v439_v38, %v246_v41 }
 0x188   : > { %v248_v47 = vadd.f32 %v439_v38, %v247_v43 }
 0x18a   : > { %v252_v49 = vsel %vm251_vm1, %v439_v38, %v248_v47 }
 0x18b   : > { %v257_v52 = vsel %vm254_vm2, %v256_v48, %v252_v49 }
 0x18c   : > { %v258_v54 = vmul.f32 %v257_v52, %v230_v50 }
 0x18e   : > { %v260_v55 = vmul.f32 %v259_v53, %v258_v54 }
 0x190   : > { %v261_v56 = vadd.f32 %v260_v55, %v658_v1 }
 0x192   : > { %262 = vst.msk [vmem:[%s133_s10] sm:$0xff] %vm135_vm0, %v261_v56 }
 0x193   : > { %497 = shalt.err (!%p494_p4)
}
 0x194   : > { %379 = dma.vmem_to_hbm [thread:$0]  (%p601_p11), %s277_s26, 128, %s279_s27, %s264_s28  }
 0x195 PF: > { %s290_s13 = sand.u32 1, %s524_s6   ;;  %p712_p7 = scmp.ge.s32.totalorder %s536_s9, 2 }
 0x196   : > { %s291_s14 = scalar_lea.sflag [#allocation4], %s290_s13 }
 0x197   : > { %p386_p5 = pnand %p712_p7, %p605_p12 }
 0x199   : > { %p387_p8 = pneg %p386_p5 }
 0x19b   : > { %519 = dma.done.wait (%p387_p8), %s291_s14, 128  }
 0x19c   : > { %521 = vsyncadd (%p387_p8), %s291_s14, 4294967168  ;;  %p14_p10 = scmp.ge.s32.totalorder %s576_s12, 4   ;;  %s713_s6 = smov %s528_s7 }
 0x19d   : > { %s714_s7 = smov %s532_s8  ;;  %s715_s8 = smov %s588_s15 }
 0x19e   : > { %s716_s9 = smov %s576_s12  ;;  %16 = sbr.rel (!%p14_p10) target bundleno = 5 (0x5), region = 69 }
 0x1a3   :  { %297 = vsyncpa [#allocation3], 1 }
 0x1a4   :  { %299 = vsyncpa [#allocation3 + $0x1], 1 }
 0x1a5   :  { %300 = vsyncpa [#allocation4], 1 }
 0x1a6   :  { %302 = vsyncpa [#allocation4 + $0x1], 1 }

</bundles_post_ra>
